<compile_context>
chip_gen: v6e
topology: v6e:2x2x1
jax: 0.10.0
libtpu: 0.0.40
codegen_flags: <defaults>
</compile_context>

<pallas_src>
import functools
import math

import jax
import jax.numpy as jnp
from jax.experimental import pallas as pl
from jax.experimental.pallas import tpu as pltpu


def _to_i32(u):
    """Reinterpret a 32-bit unsigned Python int as a signed int32 value."""
    u &= 0xFFFFFFFF
    return u - (1 << 32) if u >= (1 << 31) else u


_GOLDEN_I32 = _to_i32(0x9E3779B9)
_MUL1_U32 = 0x7FEB352D
_MUL2_U32 = 0x846CA68B

_P1_TARGET_ELEMS = 1024 * 1024   # pass 1 does no tensor DMA -> fat tiles
_P2_TARGET_ELEMS = 512 * 1024    # pass 2: ~2 MiB f32 per buffer


def _hash_keep(flat_i32, seed_i32, threshold):
    """Bernoulli(keep_prob) mask from global flat indices (lowbias32 hash).

    Shifts run in uint32 (natively logical: no extra mask ops); the final
    compare is signed against a precomputed int32 threshold.
    """
    mixed = flat_i32 ^ (seed_i32 * jnp.int32(_GOLDEN_I32))  # xor: bits identical
    h = pltpu.bitcast(mixed, jnp.uint32)
    h = h ^ (h >> 16)
    h = h * jnp.uint32(_MUL1_U32)
    h = h ^ (h >> 15)
    h = h * jnp.uint32(_MUL2_U32)
    h = h ^ (h >> 16)
    return pltpu.bitcast(h, jnp.int32) > jnp.int32(threshold)


def _count_kernel(seed_ref, base_ref, cnt_ref, *, tile_elems, threshold, numel,
                  mask_tail):
    """Pass 1: per-tile partial kept-counts (no tensor DMA at all)."""
    i = pl.program_id(0)
    flat = base_ref[...] + i * jnp.int32(tile_elems)
    keep = _hash_keep(flat, seed_ref[0], threshold)
    if mask_tail:
        keep = jnp.logical_and(keep, flat < jnp.int32(numel))  # ignore padding
    cnt_ref[0] = jnp.sum(keep.astype(jnp.int32), axis=0, keepdims=True)


def _apply_kernel(seed_ref, ratio_ref, base_ref, x_ref, o_ref, *, tile_elems,
                  threshold):
    """Pass 2: regenerate the identical mask, scale kept elements by ratio."""
    i = pl.program_id(0)
    flat = base_ref[...] + i * jnp.int32(tile_elems)
    keep = _hash_keep(flat, seed_ref[0], threshold)
    scale = ratio_ref[0].astype(o_ref.dtype)        # native-dtype math (bf16 ok)
    o_ref[...] = jnp.where(keep, x_ref[...] * scale,
                           jnp.zeros((), dtype=o_ref.dtype))


def _largest_divisor_tile(rows, target_rows):
    """Largest row-tile <= target that is a multiple of 8 and divides rows,
    or rows itself if a single (full-dim) block fits the target."""
    if rows <= target_rows:
        return rows
    for cand in range((target_rows // 8) * 8, 7, -8):
        if rows % cand == 0:
            return cand
    return None


def dropout(x, seed, keep_prob=0.5, training=True):
    """x: [B, C, H, W] float array. seed: int. Returns same shape/dtype."""
    if not training:
        return x

    orig_shape = x.shape
    numel = math.prod(orig_shape)
    if numel == 0:
        return x
    assert numel < (1 << 31), "int32 flat indices require numel < 2**31"

    # keep  <=>  hash_i32 > threshold  <=>  P(keep) = keep_prob
    threshold = (1 << 31) - 1 - int(round(float(keep_prob) * float(1 << 32)))
    threshold = max(-(1 << 31), min((1 << 31) - 1, threshold))

    # Lane-dense layout: (rows, lanes), lanes a multiple of 128.
    lanes = 128
    for cand in (2048, 1024, 512, 256, 128):
        if numel % cand == 0:
            lanes = cand
            break
    rows = -(-numel // lanes)

    p2_target_rows = max(1, _P2_TARGET_ELEMS // lanes)
    p1_target_rows = max(1, _P1_TARGET_ELEMS // lanes)

    tile2 = _largest_divisor_tile(rows, p2_target_rows)
    if numel == rows * lanes and tile2 is not None:
        rows_p = rows                                 # common path: no padding
    else:
        # TODO(synk): ragged sizes fall back to a pad/slice copy of x.
        tile2 = min(-(-rows // 8) * 8, max(8, (p2_target_rows // 8) * 8))
        rows_p = -(-rows // tile2) * tile2
    tile1 = _largest_divisor_tile(rows_p, p1_target_rows)

    padded = rows_p * lanes
    mask_tail = padded != numel
    num_tiles1 = rows_p // tile1
    num_tiles2 = rows_p // tile2

    flat = x.reshape(-1)
    if mask_tail:
        flat = jnp.pad(flat, (0, padded - numel))
    x2d = flat.reshape(rows_p, lanes)

    seed_arr = jnp.asarray([seed], dtype=jnp.int32)
    # Tile-invariant base index planes (row*lanes + col), computed once.
    base1 = jnp.arange(tile1 * lanes, dtype=jnp.int32).reshape(tile1, lanes)
    base2 = jnp.arange(tile2 * lanes, dtype=jnp.int32).reshape(tile2, lanes)

    # Pass 1: per-tile partial kept-counts (pure hashing, fat tiles, parallel).
    partial_counts = pl.pallas_call(
        functools.partial(_count_kernel, tile_elems=tile1 * lanes,
                          threshold=threshold, numel=numel,
                          mask_tail=mask_tail),
        grid=(num_tiles1,),
        in_specs=[
            pl.BlockSpec(memory_space=pltpu.MemorySpace.SMEM),         # seed
            pl.BlockSpec((tile1, lanes), lambda i: (0, 0)),            # base idx
        ],
        out_specs=pl.BlockSpec((1, 1, lanes), lambda i: (i, 0, 0)),
        out_shape=jax.ShapeDtypeStruct((num_tiles1, 1, lanes), jnp.int32),
        compiler_params=pltpu.CompilerParams(
            dimension_semantics=("parallel",),
            vmem_limit_bytes=48 * 1024 * 1024),
    )(seed_arr, base1)

    count = jnp.sum(partial_counts)
    ratio = (jnp.float32(numel)
             / jnp.maximum(count, 1).astype(jnp.float32)).reshape(1)

    # Pass 2: stream x once through double-buffered lane-dense VMEM tiles.
    out2d = pl.pallas_call(
        functools.partial(_apply_kernel, tile_elems=tile2 * lanes,
                          threshold=threshold),
        grid=(num_tiles2,),
        in_specs=[
            pl.BlockSpec(memory_space=pltpu.MemorySpace.SMEM),         # seed
            pl.BlockSpec(memory_space=pltpu.MemorySpace.SMEM),         # ratio
            pl.BlockSpec((tile2, lanes), lambda i: (0, 0)),            # base idx
            pl.BlockSpec((tile2, lanes), lambda i: (i, 0)),            # x tile
        ],
        out_specs=pl.BlockSpec((tile2, lanes), lambda i: (i, 0)),
        out_shape=jax.ShapeDtypeStruct((rows_p, lanes), x.dtype),
        compiler_params=pltpu.CompilerParams(
            dimension_semantics=("parallel",),
            vmem_limit_bytes=48 * 1024 * 1024),
    )(seed_arr, ratio, base2, x2d)

    out = out2d.reshape(-1)
    if mask_tail:
        out = out[:numel]
    return out.reshape(orig_shape)


if __name__ == "__main__":
    key = jax.random.PRNGKey(0)
    x = jax.random.normal(key, (2, 4, 16, 16), dtype=jnp.float32)

    out = jax.block_until_ready(dropout(x, seed=0, keep_prob=0.5, training=True))

    # Shape/dtype preserved, values finite.
    assert out.shape == x.shape and out.dtype == x.dtype
    assert bool(jnp.all(jnp.isfinite(out)))

    # Roughly keep_prob of the elements survive (loose band for 2048 samples).
    drop_frac = float(jnp.mean((out == 0).astype(jnp.float32)))
    assert 0.25 < drop_frac < 0.75, drop_frac

    # Kept elements equal x * (numel / kept_count)  -> empirical rescale.
    kept_mask = out != 0
    kept = int(jnp.sum(kept_mask))
    ratio = x.size / max(kept, 1)
    assert bool(jnp.allclose(jnp.where(kept_mask, out, 0),
                             jnp.where(kept_mask, x * ratio, 0),
                             rtol=1e-5, atol=1e-6))

    # Eval mode is identity.
    out_eval = jax.block_until_ready(dropout(x, seed=0, training=False))
    assert bool(jnp.allclose(out_eval, x))

    # Exercise the ragged / padded fallback path (numel not a multiple of 128).
    x2 = jax.random.normal(jax.random.PRNGKey(1), (2, 3, 5, 7), dtype=jnp.float32)
    out2 = jax.block_until_ready(dropout(x2, seed=3, keep_prob=0.8))
    assert out2.shape == x2.shape and bool(jnp.all(jnp.isfinite(out2)))

    print("KERNEL_OK")
</pallas_src>

<mosaic_0001>
module attributes {stable_mosaic.version = 11 : i64} {
  func.func @_count_kernel(%arg0: i32, %arg1: memref<1xi32, #tpu.memory_space<smem>>, %arg2: memref<1x2048xi32, #tpu.memory_space<vmem>>, %arg3: memref<1x1x2048xi32, #tpu.memory_space<vmem>>) attributes {dimension_semantics = [#tpu.dimension_semantics<parallel>], iteration_bounds = array<i64: 1>, scalar_prefetch = 0 : i64, scratch_operands = 0 : i64, tpu.core_type = #tpu.core_type<tc>, window_params = [{transform_indices = @transform_0, window_bounds = array<i64: 1>}, {pipeline_mode = #tpu.pipeline_mode<synchronous>, transform_indices = @transform_1, window_bounds = array<i64: 1, 2048>}, {transform_indices = @transform_2, window_bounds = array<i64: 1, 1, 2048>}]} {
    %c0 = arith.constant 0 : index
    %c0_0 = arith.constant 0 : index
    %0 = vector.load %arg2[%c0, %c0_0] : memref<1x2048xi32, #tpu.memory_space<vmem>>, vector<1x2048xi32>
    %c2048_i32 = arith.constant 2048 : i32
    %1 = arith.muli %arg0, %c2048_i32 : i32
    %2 = vector.broadcast %1 : i32 to vector<1x2048xi32>
    %3 = arith.addi %0, %2 : vector<1x2048xi32>
    %c0_1 = arith.constant 0 : index
    %4 = memref.load %arg1[%c0_1] : memref<1xi32, #tpu.memory_space<smem>>
    %c-1640531527_i32 = arith.constant -1640531527 : i32
    %5 = arith.muli %4, %c-1640531527_i32 : i32
    %6 = vector.broadcast %5 : i32 to vector<1x2048xi32>
    %7 = arith.xori %3, %6 : vector<1x2048xi32>
    %8 = tpu.bitcast %7 : vector<1x2048xi32> -> vector<1x2048xi32>
    %c16_i32 = arith.constant 16 : i32
    %9 = vector.broadcast %c16_i32 : i32 to vector<1x2048xi32>
    %10 = arith.shrui %8, %9 : vector<1x2048xi32>
    %11 = arith.xori %8, %10 : vector<1x2048xi32>
    %c2146121005_i32 = arith.constant 2146121005 : i32
    %12 = vector.broadcast %c2146121005_i32 : i32 to vector<1x2048xi32>
    %13 = arith.muli %11, %12 : vector<1x2048xi32>
    %c15_i32 = arith.constant 15 : i32
    %14 = vector.broadcast %c15_i32 : i32 to vector<1x2048xi32>
    %15 = arith.shrui %13, %14 : vector<1x2048xi32>
    %16 = arith.xori %13, %15 : vector<1x2048xi32>
    %c-2073254261_i32 = arith.constant -2073254261 : i32
    %17 = vector.broadcast %c-2073254261_i32 : i32 to vector<1x2048xi32>
    %18 = arith.muli %16, %17 : vector<1x2048xi32>
    %c16_i32_2 = arith.constant 16 : i32
    %19 = vector.broadcast %c16_i32_2 : i32 to vector<1x2048xi32>
    %20 = arith.shrui %18, %19 : vector<1x2048xi32>
    %21 = arith.xori %18, %20 : vector<1x2048xi32>
    %22 = tpu.bitcast %21 : vector<1x2048xi32> -> vector<1x2048xi32>
    %c-1_i32 = arith.constant -1 : i32
    %23 = vector.broadcast %c-1_i32 : i32 to vector<1x2048xi32>
    %24 = arith.cmpi sgt, %22, %23 : vector<1x2048xi32>
    %25 = arith.extui %24 : vector<1x2048xi1> to vector<1x2048xi32>
    %cst = arith.constant dense<0> : vector<2048xi32>
    %26 = vector.multi_reduction <add>, %25, %cst [0] : vector<1x2048xi32> to vector<2048xi32>
    %27 = vector.shape_cast %26 : vector<2048xi32> to vector<1x2048xi32>
    %c0_3 = arith.constant 0 : index
    %c0_4 = arith.constant 0 : index
    %c0_5 = arith.constant 0 : index
    %28 = vector.load %arg3[%c0_3, %c0_4, %c0_5] : memref<1x1x2048xi32, #tpu.memory_space<vmem>>, vector<1x1x2048xi32>
    %29 = vector.shape_cast %28 : vector<1x1x2048xi32> to vector<1x2048xi32>
    %30 = vector.shape_cast %27 : vector<1x2048xi32> to vector<1x1x2048xi32>
    tpu.vector_store %arg3[%c0_3, %c0_4, %c0_5], %30 {strides = array<i32>} : memref<1x1x2048xi32, #tpu.memory_space<vmem>>, vector<1x1x2048xi32>,
    return
  }
  func.func @transform_0(%arg0: i32) -> i32 {
    %c0_i32 = arith.constant 0 : i32
    %c0_i32_0 = arith.constant 0 : i32
    return %c0_i32 : i32
  }
  func.func @transform_1(%arg0: i32) -> (i32, i32) {
    %c0_i32 = arith.constant 0 : i32
    %c0_i32_0 = arith.constant 0 : i32
    %c0_i32_1 = arith.constant 0 : i32
    return %c0_i32, %c0_i32_0 : i32, i32
  }
  func.func @transform_2(%arg0: i32) -> (i32, i32, i32) {
    %c0_i32 = arith.constant 0 : i32
    %c0_i32_0 = arith.constant 0 : i32
    %c0_i32_1 = arith.constant 0 : i32
    return %arg0, %c0_i32, %c0_i32_0 : i32, i32, i32
  }
}

</mosaic_0001>

<bundles_post_ra>
// kernel: tpu_custom_call.1
= control target key start
LH: loop header
LB: loop body
LE: loop exit
PB: predicated region body
PF: predicated region fallthrough
CT: control target
= control target key end

     0   :  { %8 = vsyncpa [#allocation4], 0  ;;  %s534_s0 = inlined_call_operand.<no memory space> [shape: s32[1], index: 0, kind: input, shape index: {}]   ;;  %s535_s1 = inlined_call_operand.hbm [shape: s32[1,2048], index: 1, kind: input, shape index: {}]   ;;  %s536_s2 = inlined_call_operand.hbm [shape: s32[1,1,2048], index: 2, kind: output, shape index: {}]  }
   0x1   :  { %9 = vsyncpa [#allocation5], 0  ;;  %s423_s9 = smov [#allocation3]  }
   0x2   :  { %s18_s10 = sshll.u32 %s423_s9, 4  ;;  %s19_s10 = int_to_ptr.vmem [resolvable:$true] %s18_s10 }
   0x3   :  { %s387_s11 = scalar_lea.vmem %s19_s10, 256  ;;  %p392_p1 = scmp.lt.s32.totalorder %s19_s10, %s19_s10 }
   0x4   :  { %p388_p0 = scmp.ne.s32.totalorder %s19_s10, %s387_s11  ;;  %p393_p2 = scmp.lt.s32.totalorder %s387_s11, %s387_s11 }
   0x6   :  { %p394_p3 = por %p393_p2, %p392_p1 }
   0x8   :  { %p395_p4 = pnand %p394_p3, %p388_p0 }
   0xa   :  { %398 = shalt.err (!%p395_p4)
}
   0xb   :  { %21 = dma.hbm_to_vmem [thread:$0]  %s535_s1, 256, %s19_s10, [#allocation4]  }
   0xc   :  { %419 = dma.done.wait [#allocation4], 256  }
   0xd   :  { %420 = vsyncadd [#allocation4], 4294967040  ;;  %v36_v0 = vlaneseq  ;;  %s32_s16 = smul.u32 2654435769, %s534_s0  ;;  %v424_v2 = vmov 1966171168  }
   0xe   :  { %v265_v3 = vunpack.c.l.s4 %v424_v2  ;;  %v25_v10 = vld [vmem:[#allocation3] sm:$0xff]  ;;  %v26_v11 = vld [vmem:[#allocation3 + $0x8] sm:$0xff]  ;;  %s426_s0 = smov [#allocation6]  }
   0xf   :  { %v448_v1 = vshrl.u32 %v36_v0, 7  ;;  %v33_v4 = vstv %s32_s16  ;;  %s366_s1 = sshll.u32 %s426_s0, 4  ;;  %s367_s1 = int_to_ptr.vmem [resolvable:$true] %s366_s1 }
  0x10   :  { %v266_v9 = vunpack.c.0.s8 %v265_v3  ;;  %v34_v16 = vxor.u32 %v33_v4, %v25_v10  ;;  %v458_v17 = vxor.u32 %v33_v4, %v26_v11  ;;  %s399_s17 = scalar_lea.vmem %s367_s1, 256  ;;  %p404_p6 = scmp.lt.s32.totalorder %s367_s1, %s367_s1 }
  0x11   :  { %v38_v5 = vsub.s32 0, %v448_v1  ;;  %v42_v6 = vsub.s32 1, %v448_v1  ;;  %v46_v7 = vsub.s32 2, %v448_v1  ;;  %v50_v8 = vsub.s32 3, %v448_v1  ;;  %p400_p5 = scmp.ne.s32.totalorder %s367_s1, %s399_s17  ;;  %p405_p7 = scmp.lt.s32.totalorder %s399_s17, %s399_s17 }
  0x12   :  { %v54_v12 = vsub.s32 4, %v448_v1  ;;  %v58_v13 = vsub.s32 5, %v448_v1  ;;  %v62_v14 = vsub.s32 6, %v448_v1  ;;  %v66_v15 = vsub.s32 7, %v448_v1 }
  0x13   :  { %v461_v18 = vsub.s32 %v266_v9, %v448_v1  ;;  %v39_v19 = vrot.slane %v34_v16, %v38_v5  ;;  %v43_v20 = vrot.slane %v34_v16, %v42_v6  ;;  %v47_v21 = vrot.slane %v34_v16, %v46_v7  ;;  %p406_p8 = por %p405_p7, %p404_p6 }
  0x14   :  { %v51_v22 = vrot.slane %v34_v16, %v50_v8  ;;  %v55_v23 = vrot.slane %v34_v16, %v54_v12  ;;  %v59_v24 = vrot.slane %v34_v16, %v58_v13  ;;  %v63_v25 = vrot.slane %v34_v16, %v62_v14 }
  0x15   :  { %v67_v26 = vrot.slane %v34_v16, %v66_v15  ;;  %v100_v27 = vshrl.u32 %v39_v19, 16  ;;  %v101_v28 = vshrl.u32 %v43_v20, 16  ;;  %v102_v29 = vshrl.u32 %v47_v21, 16  ;;  %p407_p9 = pnand %p406_p8, %p400_p5 }
  0x16   :  { %v103_v30 = vshrl.u32 %v51_v22, 16  ;;  %v104_v31 = vshrl.u32 %v55_v23, 16  ;;  %v105_v32 = vshrl.u32 %v59_v24, 16  ;;  %v106_v33 = vshrl.u32 %v63_v25, 16 }
  0x17   :  { %v107_v34 = vshrl.u32 %v67_v26, 16  ;;  %v116_v35 = vxor.u32 %v100_v27, %v39_v19  ;;  %v117_v36 = vxor.u32 %v101_v28, %v43_v20  ;;  %v118_v37 = vxor.u32 %v102_v29, %v47_v21 }
  0x18   :  { %v119_v38 = vxor.u32 %v103_v30, %v51_v22  ;;  %v120_v39 = vxor.u32 %v104_v31, %v55_v23  ;;  %v121_v40 = vxor.u32 %v105_v32, %v59_v24  ;;  %v122_v41 = vxor.u32 %v106_v33, %v63_v25 }
  0x19   :  { %v123_v42 = vxor.u32 %v107_v34, %v67_v26  ;;  %v132_v43 = vmul.u32 2146121005, %v116_v35  ;;  %v133_v44 = vmul.u32 2146121005, %v117_v36  ;;  %v472_v45 = vrot.slane %v458_v17, %v38_v5 }
  0x1a   :  { %v475_v46 = vrot.slane %v458_v17, %v42_v6  ;;  %v134_v47 = vmul.u32 2146121005, %v118_v37  ;;  %v135_v48 = vmul.u32 2146121005, %v119_v38  ;;  %v478_v49 = vrot.slane %v458_v17, %v46_v7 }
  0x1b   :  { %v481_v50 = vrot.slane %v458_v17, %v50_v8  ;;  %v136_v51 = vmul.u32 2146121005, %v120_v39  ;;  %v137_v52 = vmul.u32 2146121005, %v121_v40  ;;  %v148_v53 = vshrl.u32 %v132_v43, 15 }
  0x1c   :  { %v149_v54 = vshrl.u32 %v133_v44, 15  ;;  %v138_v55 = vmul.u32 2146121005, %v122_v41  ;;  %v139_v56 = vmul.u32 2146121005, %v123_v42  ;;  %v150_v57 = vshrl.u32 %v134_v47, 15 }
  0x1d   :  { %v151_v58 = vshrl.u32 %v135_v48, 15  ;;  %v152_v59 = vshrl.u32 %v136_v51, 15  ;;  %v153_v60 = vshrl.u32 %v137_v52, 15  ;;  %v164_v61 = vxor.u32 %v148_v53, %v132_v43 }
  0x1e   :  { %v165_v62 = vxor.u32 %v149_v54, %v133_v44  ;;  %v154_v63 = vshrl.u32 %v138_v55, 15  ;;  %v155_v0 = vshrl.u32 %v139_v56, 15  ;;  %v166_v2 = vxor.u32 %v150_v57, %v134_v47 }
  0x1f   :  { %v167_v3 = vxor.u32 %v151_v58, %v135_v48  ;;  %v168_v4 = vxor.u32 %v152_v59, %v136_v51  ;;  %v169_v5 = vxor.u32 %v153_v60, %v137_v52  ;;  %v180_v6 = vmul.u32 2221713035, %v164_v61 }
  0x20   :  { %v181_v7 = vmul.u32 2221713035, %v165_v62  ;;  %v170_v8 = vxor.u32 %v154_v63, %v138_v55  ;;  %v171_v9 = vxor.u32 %v155_v0, %v139_v56  ;;  %v182_v10 = vmul.u32 2221713035, %v166_v2 }
  0x21   :  { %v183_v11 = vmul.u32 2221713035, %v167_v3  ;;  %v184_v16 = vmul.u32 2221713035, %v168_v4  ;;  %v196_v20 = vshrl.u32 %v180_v6, 16  ;;  %v425_v38 = vmov 0  }
  0x22   :  { %v185_v19 = vmul.u32 2221713035, %v169_v5  ;;  %v197_v21 = vshrl.u32 %v181_v7, 16  ;;  %v186_v22 = vmul.u32 2221713035, %v170_v8  ;;  %v198_v24 = vshrl.u32 %v182_v10, 16 }
  0x23   :  { %v187_v23 = vmul.u32 2221713035, %v171_v9  ;;  %v199_v25 = vshrl.u32 %v183_v11, 16  ;;  %v200_v26 = vshrl.u32 %v184_v16, 16  ;;  %v212_v28 = vxor.u32 %v196_v20, %v180_v6 }
  0x24   :  { %v201_v27 = vshrl.u32 %v185_v19, 16  ;;  %v213_v29 = vxor.u32 %v197_v21, %v181_v7  ;;  %v202_v30 = vshrl.u32 %v186_v22, 16  ;;  %v214_v32 = vxor.u32 %v198_v24, %v182_v10 }
  0x25   :  { %v203_v31 = vshrl.u32 %v187_v23, 16  ;;  %v215_v33 = vxor.u32 %v199_v25, %v183_v11  ;;  %v216_v34 = vxor.u32 %v200_v26, %v184_v16  ;;  %vm228_vm0 = vcmp.gt.s32.totalorder %v212_v28, 4294967295 }
  0x26   :  { %v217_v35 = vxor.u32 %v201_v27, %v185_v19  ;;  %vm229_vm1 = vcmp.gt.s32.totalorder %v213_v29, 4294967295  ;;  %v218_v36 = vxor.u32 %v202_v30, %v186_v22  ;;  %vm230_vm2 = vcmp.gt.s32.totalorder %v214_v32, 4294967295 }
  0x27   :  { %v219_v37 = vxor.u32 %v203_v31, %v187_v23  ;;  %vm231_vm3 = vcmp.gt.s32.totalorder %v215_v33, 4294967295  ;;  %vm232_vm4 = vcmp.gt.s32.totalorder %v216_v34, 4294967295  ;;  %v244_v39 = vsel %vm228_vm0, 1, %v425_v38 }
  0x28   :  { %vm233_vm5 = vcmp.gt.s32.totalorder %v217_v35, 4294967295  ;;  %v245_v40 = vsel %vm229_vm1, 1, %v425_v38  ;;  %vm234_vm6 = vcmp.gt.s32.totalorder %v218_v36, 4294967295  ;;  %v246_v41 = vsel %vm230_vm2, 1, %v425_v38 }
  0x29   :  { %vm235_vm7 = vcmp.gt.s32.totalorder %v219_v37, 4294967295  ;;  %v247_v42 = vsel %vm231_vm3, 1, %v425_v38  ;;  %v248_v43 = vsel %vm232_vm4, 1, %v425_v38  ;;  %v249_v44 = vsel %vm233_vm5, 1, %v425_v38 }
  0x2a   :  { %v250_v47 = vsel %vm234_vm6, 1, %v425_v38  ;;  %v251_v48 = vsel %vm235_vm7, 1, %v425_v38  ;;  %v260_v51 = vcombine.low %v244_v39, %v245_v40  ;;  %v261_v52 = vcombine.low %v246_v41, %v247_v42 }
  0x2b   :  { %v262_v53 = vcombine.low %v248_v43, %v249_v44  ;;  %v263_v54 = vcombine.low %v250_v47, %v251_v48  ;;  %v87_v55 = vrot.slane %v458_v17, %v54_v12  ;;  %v91_v56 = vrot.slane %v458_v17, %v58_v13 }
  0x2c   :  { %v95_v57 = vrot.slane %v458_v17, %v62_v14  ;;  %v99_v58 = vrot.slane %v458_v17, %v66_v15  ;;  %v270_v59 = vrot.slane %v260_v51, %v461_v18  ;;  %v277_v60 = vrot.slane %v261_v52, %v461_v18 }
  0x2d   :  { %v284_v61 = vrot.slane %v262_v53, %v461_v18  ;;  %v291_v12 = vrot.slane %v263_v54, %v461_v18  ;;  %v108_v62 = vshrl.u32 %v472_v45, 16  ;;  %v109_v13 = vshrl.u32 %v475_v46, 16 }
  0x2e   :  { %v110_v63 = vshrl.u32 %v478_v49, 16  ;;  %v111_v14 = vshrl.u32 %v481_v50, 16  ;;  %v292_v0 = vcombine.low %v270_v59, %v277_v60  ;;  %v112_v2 = vshrl.u32 %v87_v55, 16 }
  0x2f   :  { %v293_v1 = vcombine.low %v284_v61, %v291_v12  ;;  %v113_v15 = vshrl.u32 %v91_v56, 16  ;;  %v114_v17 = vshrl.u32 %v95_v57, 16  ;;  %v115_v3 = vshrl.u32 %v99_v58, 16 }
  0x30   :  { %v124_v4 = vxor.u32 %v108_v62, %v472_v45  ;;  %v125_v5 = vxor.u32 %v109_v13, %v475_v46  ;;  %v300_v6 = vrot.slane %v292_v0, %v461_v18  ;;  %v126_v8 = vxor.u32 %v110_v63, %v478_v49 }
  0x31   :  { %v307_v7 = vrot.slane %v293_v1, %v461_v18  ;;  %v127_v9 = vxor.u32 %v111_v14, %v481_v50  ;;  %v128_v10 = vxor.u32 %v112_v2, %v87_v55  ;;  %v129_v11 = vxor.u32 %v113_v15, %v91_v56 }
  0x32   :  { %v130_v16 = vxor.u32 %v114_v17, %v95_v57  ;;  %v131_v19 = vxor.u32 %v115_v3, %v99_v58  ;;  %v140_v21 = vmul.u32 2146121005, %v124_v4  ;;  %v141_v22 = vmul.u32 2146121005, %v125_v5 }
  0x33   :  { %v308_v20 = vcombine.low %v300_v6, %v307_v7  ;;  %v142_v23 = vmul.u32 2146121005, %v126_v8  ;;  %v143_v24 = vmul.u32 2146121005, %v127_v9 }
  0x34   :  { %v144_v45 = vmul.u32 2146121005, %v128_v10  ;;  %v145_v46 = vmul.u32 2146121005, %v129_v11  ;;  %v156_v25 = vshrl.u32 %v140_v21, 15  ;;  %v157_v26 = vshrl.u32 %v141_v22, 15 }
  0x35   :  { %358 = vst [vmem:[#allocation6] sm:$0xff] %v308_v20  ;;  %v146_v27 = vmul.u32 2146121005, %v130_v16  ;;  %v147_v28 = vmul.u32 2146121005, %v131_v19  ;;  %v158_v29 = vshrl.u32 %v142_v23, 15 }
  0x36   :  { %v159_v49 = vshrl.u32 %v143_v24, 15  ;;  %v160_v30 = vshrl.u32 %v144_v45, 15  ;;  %v161_v50 = vshrl.u32 %v145_v46, 15  ;;  %v172_v31 = vxor.u32 %v156_v25, %v140_v21 }
  0x37   :  { %v173_v32 = vxor.u32 %v157_v26, %v141_v22  ;;  %v162_v33 = vshrl.u32 %v146_v27, 15  ;;  %v163_v34 = vshrl.u32 %v147_v28, 15  ;;  %v174_v35 = vxor.u32 %v158_v29, %v142_v23 }
  0x38   :  { %v175_v36 = vxor.u32 %v159_v49, %v143_v24  ;;  %v176_v37 = vxor.u32 %v160_v30, %v144_v45  ;;  %v177_v39 = vxor.u32 %v161_v50, %v145_v46  ;;  %v188_v40 = vmul.u32 2221713035, %v172_v31 }
  0x39   :  { %v189_v41 = vmul.u32 2221713035, %v173_v32  ;;  %v178_v42 = vxor.u32 %v162_v33, %v146_v27  ;;  %v179_v43 = vxor.u32 %v163_v34, %v147_v28  ;;  %v190_v44 = vmul.u32 2221713035, %v174_v35 }
  0x3a   :  { %v191_v47 = vmul.u32 2221713035, %v175_v36  ;;  %v192_v48 = vmul.u32 2221713035, %v176_v37  ;;  %v204_v52 = vshrl.u32 %v188_v40, 16 }
  0x3b   :  { %v193_v51 = vmul.u32 2221713035, %v177_v39  ;;  %v205_v53 = vshrl.u32 %v189_v41, 16  ;;  %v194_v54 = vmul.u32 2221713035, %v178_v42  ;;  %v206_v56 = vshrl.u32 %v190_v44, 16 }
  0x3c   :  { %v195_v55 = vmul.u32 2221713035, %v179_v43  ;;  %v207_v57 = vshrl.u32 %v191_v47, 16  ;;  %v208_v58 = vshrl.u32 %v192_v48, 16  ;;  %v220_v60 = vxor.u32 %v204_v52, %v188_v40 }
  0x3d   :  { %v209_v59 = vshrl.u32 %v193_v51, 16  ;;  %v221_v61 = vxor.u32 %v205_v53, %v189_v41  ;;  %v210_v12 = vshrl.u32 %v194_v54, 16  ;;  %v222_v13 = vxor.u32 %v206_v56, %v190_v44 }
  0x3e   :  { %v211_v62 = vshrl.u32 %v195_v55, 16  ;;  %v223_v63 = vxor.u32 %v207_v57, %v191_v47  ;;  %v224_v14 = vxor.u32 %v208_v58, %v192_v48  ;;  %vm236_vm8 = vcmp.gt.s32.totalorder %v220_v60, 4294967295 }
  0x3f   :  { %v225_v0 = vxor.u32 %v209_v59, %v193_v51  ;;  %vm237_vm9 = vcmp.gt.s32.totalorder %v221_v61, 4294967295  ;;  %v226_v1 = vxor.u32 %v210_v12, %v194_v54  ;;  %vm238_vm10 = vcmp.gt.s32.totalorder %v222_v13, 4294967295 }
  0x40   :  { %v227_v2 = vxor.u32 %v211_v62, %v195_v55  ;;  %vm239_vm11 = vcmp.gt.s32.totalorder %v223_v63, 4294967295  ;;  %vm240_vm12 = vcmp.gt.s32.totalorder %v224_v14, 4294967295  ;;  %v252_v15 = vsel %vm236_vm8, 1, %v425_v38 }
  0x41   :  { %vm241_vm13 = vcmp.gt.s32.totalorder %v225_v0, 4294967295  ;;  %v253_v17 = vsel %vm237_vm9, 1, %v425_v38  ;;  %vm242_vm14 = vcmp.gt.s32.totalorder %v226_v1, 4294967295  ;;  %v254_v3 = vsel %vm238_vm10, 1, %v425_v38 }
  0x42   :  { %vm243_vm15 = vcmp.gt.s32.totalorder %v227_v2, 4294967295  ;;  %v255_v4 = vsel %vm239_vm11, 1, %v425_v38  ;;  %v256_v5 = vsel %vm240_vm12, 1, %v425_v38  ;;  %v257_v6 = vsel %vm241_vm13, 1, %v425_v38 }
  0x43   :  { %v258_v7 = vsel %vm242_vm14, 1, %v425_v38  ;;  %v259_v8 = vsel %vm243_vm15, 1, %v425_v38  ;;  %v309_v9 = vcombine.low %v252_v15, %v253_v17  ;;  %v310_v10 = vcombine.low %v254_v3, %v255_v4 }
  0x44   :  { %v311_v11 = vcombine.low %v256_v5, %v257_v6  ;;  %v312_v16 = vcombine.low %v258_v7, %v259_v8 }
  0x45   :  { %v319_v19 = vrot.slane %v309_v9, %v461_v18  ;;  %v326_v20 = vrot.slane %v310_v10, %v461_v18 }
  0x46   :  { %v333_v21 = vrot.slane %v311_v11, %v461_v18  ;;  %v340_v22 = vrot.slane %v312_v16, %v461_v18 }
  0x47   :  { %v341_v23 = vcombine.low %v319_v19, %v326_v20 }
  0x48   :  { %v342_v24 = vcombine.low %v333_v21, %v340_v22 }
  0x49   :  { %v349_v45 = vrot.slane %v341_v23, %v461_v18 }
  0x4a   :  { %v356_v38 = vrot.slane %v342_v24, %v461_v18 }
  0x4c   :  { %v357_v46 = vcombine.low %v349_v45, %v356_v38 }
  0x4e   :  { %359 = vst [vmem:[#allocation6 + $0x8] sm:$0xff] %v357_v46 }
  0x4f   :  { %410 = shalt.err (!%p407_p9)
}
  0x50   :  { %369 = dma.vmem_to_hbm [thread:$0]  %s367_s1, 256, %s536_s2, [#allocation5]  }
  0x51   :  { %421 = dma.done.wait [#allocation5], 256  }
  0x52   :  { %422 = vsyncadd [#allocation5], 4294967040 }
  0x53   :  { %373 = vsyncpa [#allocation4], 1 }
  0x54   :  { %374 = vsyncpa [#allocation5], 1 }

</bundles_post_ra>
